<compile_context>
chip_gen: v5e
topology: v5e:2x2
jax: 0.10.0
libtpu: 0.0.40
codegen_flags: <defaults>
</compile_context>

<pallas_src>
import functools

import jax
import jax.numpy as jnp
from jax import lax
from jax.experimental import pallas as pl
from jax.experimental.pallas import tpu as pltpu

BLOCK_SIZE = 4       # max sequence length (causal mask size)
EMBEDDING_DIM = 32   # C
HEAD_SIZE = 16       # head_size
DROPOUT = 0.2        # unused (eval mode)

# Target flattened rows per grid step.  128 keeps the (rows x rows) f32 score
# matrix + exp intermediates at ~100 KiB (comfortably inside v5e/v6e/v7x
# scoped VMEM with double-buffered x/out blocks), matches v5e's 128-wide MXU,
# and bounds the fraction of masked-garbage score work.
_MAX_ROWS_PER_STEP = 128


def _head_kernel(x_ref, w_ref, bias_ref, o_ref, *, head_size):
    # x_ref:    (N, C)   bf16, N = Bb*T (flattened batch chunk)
    # w_ref:    (C, 3H)  bf16 fused [Wk^T | scale*Wq^T | Wv^T] (resident)
    # bias_ref: (N, N)   f32 additive mask: 0 inside own-batch causal window,
    #                    -inf elsewhere (resident; identical every step)
    # o_ref:    (N, H)   f32
    H = head_size

    # One wide MXU matmul for the three fused projections, f32 accumulation.
    kqv = jnp.dot(x_ref[...], w_ref[...], preferred_element_type=jnp.float32)
    # bf16 operands for the remaining MXU dots; softmax math stays f32.
    k = kqv[:, 0 * H:1 * H].astype(jnp.bfloat16)
    q = kqv[:, 1 * H:2 * H].astype(jnp.bfloat16)
    v = kqv[:, 2 * H:3 * H].astype(jnp.bfloat16)

    # Scores q @ k^T (the 1/sqrt(H) scale is pre-folded into the query weight)
    # without materializing a transpose: contract the head dim of both sides.
    wei = lax.dot_general(
        q, k,
        dimension_numbers=(((1,), (1,)), ((), ())),
        preferred_element_type=jnp.float32,
    )                                                 # (N, N) f32

    # Block-diagonal causal mask via the precomputed additive bias.
    wei = wei + bias_ref[...]

    # Numerically stable softmax along the last axis (f32).  The diagonal is
    # always unmasked, so the row max is finite and the row sum is > 0.
    m = jnp.max(wei, axis=-1, keepdims=True)
    e = jnp.exp(wei - m)
    s = jnp.sum(e, axis=-1, keepdims=True)
    p = e * pl.reciprocal(s, approx=True)             # EUP vrcp

    # Weighted sum of values; cross-batch weights are exactly zero.
    o_ref[...] = jnp.dot(p.astype(jnp.bfloat16), v,
                         preferred_element_type=jnp.float32).astype(o_ref.dtype)


def _default_batch_block(B, T):
    """Largest divisor of B whose flattened rows obey the 8-sublane rule and
    stay under the per-step cap; prefer >=2 grid steps when the batch allows
    it (v7x has 2 TensorCores and the grid axis is marked "parallel")."""
    cands = [b for b in range(1, B + 1)
             if B % b == 0 and (b * T) % 8 == 0 and b * T <= _MAX_ROWS_PER_STEP]
    if not cands:
        return B  # whole batch: block == full array extent is always legal
    bb = max(cands)
    if bb == B and (B // 2) in cands:
        bb = B // 2
    return bb


def head_forward(x, w_key, w_query, w_value, *, batch_block=None):
    """x: (B, T, C) float32; w_*: (head_size, C) float32 (PyTorch Linear layout).

    Returns (B, T, head_size) float32, matching Head.forward in eval mode.
    """
    B, T, C = x.shape
    H = w_key.shape[0]
    assert w_key.shape == (H, C) and w_query.shape == (H, C) and w_value.shape == (H, C)
    assert T <= BLOCK_SIZE, "sequence length must be <= block_size"

    Bb = _default_batch_block(B, T) if batch_block is None else batch_block
    assert B % Bb == 0, "batch_block must divide B"
    N = Bb * T
    assert N % 8 == 0 or N == B * T, (
        "batch_block*T must be a multiple of 8 (TPU sublane rule) or cover the "
        "whole batch")
    num_steps = B // Bb

    # Fused, pre-transposed weight (C, 3H) = [Wk^T | scale*Wq^T | Wv^T], bf16
    # for the MXU, with the attention scale folded into the query columns.
    scale = jnp.float32(H) ** jnp.float32(-0.5)
    w_kqv = jnp.concatenate([w_key.T, w_query.T * scale, w_value.T], axis=1)
    w_kqv = w_kqv.astype(jnp.bfloat16)

    # Flattened bf16 activations.
    x2d = x.reshape(B * T, C).astype(jnp.bfloat16)

    # Precomputed block-diagonal causal additive bias (0 / -inf): position
    # (r, c) is allowed iff same batch element (r//T == c//T) and c <= r.
    # Identical for every grid step -> resident in VMEM.
    r = jnp.arange(N)[:, None]
    c = jnp.arange(N)[None, :]
    allowed = ((r // T) == (c // T)) & (c <= r)
    bias = jnp.where(allowed, 0.0, -jnp.inf).astype(jnp.float32)

    kernel = functools.partial(_head_kernel, head_size=H)

    out2d = pl.pallas_call(
        kernel,
        out_shape=jax.ShapeDtypeStruct((B * T, H), jnp.float32),
        grid_spec=pltpu.PrefetchScalarGridSpec(
            num_scalar_prefetch=0,
            grid=(num_steps,),
            in_specs=[
                pl.BlockSpec((N, C), lambda i: (i, 0)),       # flattened x chunk
                pl.BlockSpec((C, 3 * H), lambda i: (0, 0)),   # fused weights (resident)
                pl.BlockSpec((N, N), lambda i: (0, 0)),       # causal bias (resident)
            ],
            out_specs=pl.BlockSpec((N, H), lambda i: (i, 0)),
        ),
        compiler_params=pltpu.CompilerParams(
            dimension_semantics=("parallel",),
        ),
    )(x2d, w_kqv, bias)

    return out2d.reshape(B, T, H)


def head_reference(x, w_key, w_query, w_value):
    """Pure-JAX f32 reference of Head.forward (eval mode)."""
    k = x @ w_key.T
    q = x @ w_query.T
    v = x @ w_value.T
    wei = (q @ jnp.swapaxes(k, -2, -1)) * (k.shape[-1] ** -0.5)
    T = x.shape[1]
    tril = jnp.tril(jnp.ones((T, T), dtype=bool))
    wei = jnp.where(tril[None, :, :], wei, -jnp.inf)
    wei = jax.nn.softmax(wei, axis=-1)
    return wei @ v


if __name__ == "__main__":
    key = jax.random.PRNGKey(0)
    k_x, k_wk, k_wq, k_wv = jax.random.split(key, 4)

    B, T, C, H = 2, BLOCK_SIZE, EMBEDDING_DIM, HEAD_SIZE

    x = jax.random.normal(k_x, (B, T, C), dtype=jnp.float32)
    # nn.Linear(bias=False) weights are (out_features, in_features) = (H, C)
    w_key = jax.random.normal(k_wk, (H, C), dtype=jnp.float32) * 0.1
    w_query = jax.random.normal(k_wq, (H, C), dtype=jnp.float32) * 0.1
    w_value = jax.random.normal(k_wv, (H, C), dtype=jnp.float32) * 0.1

    out = head_forward(x, w_key, w_query, w_value)
    out = jax.block_until_ready(out)

    ref = head_reference(x, w_key, w_query, w_value)
    assert out.shape == (B, T, H)
    # bf16 MXU operands + approx reciprocal -> relaxed tolerance vs f32 ref.
    assert jnp.allclose(out, ref, atol=2e-2, rtol=2e-2), "mismatch vs reference"

    print("KERNEL_OK")
</pallas_src>

<mosaic_0001>
module attributes {stable_mosaic.version = 11 : i64} {
  func.func @_head_kernel(%arg0: i32, %arg1: memref<8x32xbf16, #tpu.memory_space<vmem>>, %arg2: memref<32x48xbf16, #tpu.memory_space<vmem>>, %arg3: memref<8x8xf32, #tpu.memory_space<vmem>>, %arg4: memref<8x16xf32, #tpu.memory_space<vmem>>) attributes {dimension_semantics = [#tpu.dimension_semantics<parallel>], iteration_bounds = array<i64: 1>, scalar_prefetch = 0 : i64, scratch_operands = 0 : i64, tpu.core_type = #tpu.core_type<tc>, window_params = [{transform_indices = @transform_0, window_bounds = array<i64: 8, 32>}, {pipeline_mode = #tpu.pipeline_mode<synchronous>, transform_indices = @transform_1, window_bounds = array<i64: 32, 48>}, {pipeline_mode = #tpu.pipeline_mode<synchronous>, transform_indices = @transform_2, window_bounds = array<i64: 8, 8>}, {transform_indices = @transform_3, window_bounds = array<i64: 8, 16>}]} {
    %c0 = arith.constant 0 : index
    %c0_0 = arith.constant 0 : index
    %0 = vector.load %arg1[%c0, %c0_0] : memref<8x32xbf16, #tpu.memory_space<vmem>>, vector<8x32xbf16>
    %c0_1 = arith.constant 0 : index
    %c0_2 = arith.constant 0 : index
    %1 = vector.load %arg2[%c0_1, %c0_2] : memref<32x48xbf16, #tpu.memory_space<vmem>>, vector<32x48xbf16>
    %cst = arith.constant dense<0.000000e+00> : vector<8x48xf32>
    %2 = tpu.matmul %0, %1, %cst {dimension_numbers = #tpu.dot_dimension_numbers<[1], [0], [0], [1], [0, 0, 1, 1], [], []>} : vector<8x32xbf16>, vector<32x48xbf16>, vector<8x48xf32> -> vector<8x48xf32>
    %3 = vector.extract_strided_slice %2 {offsets = [0, 0], sizes = [8, 16], strides = [1, 1]} : vector<8x48xf32> to vector<8x16xf32>
    %4 = arith.truncf %3 : vector<8x16xf32> to vector<8x16xbf16>
    %5 = vector.extract_strided_slice %2 {offsets = [0, 16], sizes = [8, 16], strides = [1, 1]} : vector<8x48xf32> to vector<8x16xf32>
    %6 = arith.truncf %5 : vector<8x16xf32> to vector<8x16xbf16>
    %7 = vector.extract_strided_slice %2 {offsets = [0, 32], sizes = [8, 16], strides = [1, 1]} : vector<8x48xf32> to vector<8x16xf32>
    %8 = arith.truncf %7 : vector<8x16xf32> to vector<8x16xbf16>
    %cst_3 = arith.constant dense<0.000000e+00> : vector<8x8xf32>
    %9 = tpu.matmul %6, %4, %cst_3 {dimension_numbers = #tpu.dot_dimension_numbers<[1], [1], [0], [0], [0, 0, 1, 0], [], []>} : vector<8x16xbf16>, vector<8x16xbf16>, vector<8x8xf32> -> vector<8x8xf32>
    %c0_4 = arith.constant 0 : index
    %c0_5 = arith.constant 0 : index
    %10 = vector.load %arg3[%c0_4, %c0_5] : memref<8x8xf32, #tpu.memory_space<vmem>>, vector<8x8xf32>
    %11 = arith.addf %9, %10 : vector<8x8xf32>
    %cst_6 = arith.constant dense<0xFF800000> : vector<8xf32>
    %12 = vector.multi_reduction <maximumf>, %11, %cst_6 [1] : vector<8x8xf32> to vector<8xf32>
    %13 = vector.shape_cast %12 : vector<8xf32> to vector<8x1xf32>
    %14 = vector.broadcast %13 : vector<8x1xf32> to vector<8x8xf32>
    %15 = arith.subf %11, %14 : vector<8x8xf32>
    %16 = math.exp %15 : vector<8x8xf32>
    %cst_7 = arith.constant dense<0.000000e+00> : vector<8xf32>
    %17 = vector.multi_reduction <add>, %16, %cst_7 [1] : vector<8x8xf32> to vector<8xf32>
    %18 = vector.shape_cast %17 : vector<8xf32> to vector<8x1xf32>
    %19 = tpu.reciprocal %18 {approx = true} : vector<8x1xf32> -> vector<8x1xf32>
    %20 = vector.broadcast %19 : vector<8x1xf32> to vector<8x8xf32>
    %21 = arith.mulf %16, %20 : vector<8x8xf32>
    %22 = arith.truncf %21 : vector<8x8xf32> to vector<8x8xbf16>
    %cst_8 = arith.constant dense<0.000000e+00> : vector<8x16xf32>
    %23 = tpu.matmul %22, %8, %cst_8 {dimension_numbers = #tpu.dot_dimension_numbers<[1], [0], [0], [1], [0, 0, 1, 1], [], []>} : vector<8x8xbf16>, vector<8x16xbf16>, vector<8x16xf32> -> vector<8x16xf32>
    %c0_9 = arith.constant 0 : index
    %c0_10 = arith.constant 0 : index
    %24 = vector.load %arg4[%c0_9, %c0_10] : memref<8x16xf32, #tpu.memory_space<vmem>>, vector<8x16xf32>
    tpu.vector_store %arg4[%c0_9, %c0_10], %23 {strides = array<i32>} : memref<8x16xf32, #tpu.memory_space<vmem>>, vector<8x16xf32>,
    return
  }
  func.func @transform_0(%arg0: i32) -> (i32, i32) {
    %c0_i32 = arith.constant 0 : i32
    %c0_i32_0 = arith.constant 0 : i32
    return %arg0, %c0_i32 : i32, i32
  }
  func.func @transform_1(%arg0: i32) -> (i32, i32) {
    %c0_i32 = arith.constant 0 : i32
    %c0_i32_0 = arith.constant 0 : i32
    %c0_i32_1 = arith.constant 0 : i32
    return %c0_i32, %c0_i32_0 : i32, i32
  }
  func.func @transform_2(%arg0: i32) -> (i32, i32) {
    %c0_i32 = arith.constant 0 : i32
    %c0_i32_0 = arith.constant 0 : i32
    %c0_i32_1 = arith.constant 0 : i32
    return %c0_i32, %c0_i32_0 : i32, i32
  }
  func.func @transform_3(%arg0: i32) -> (i32, i32) {
    %c0_i32 = arith.constant 0 : i32
    %c0_i32_0 = arith.constant 0 : i32
    return %arg0, %c0_i32 : i32, i32
  }
}

</mosaic_0001>

<bundles_post_ra>
// kernel: tpu_custom_call.1
= control target key start
LH: loop header
LB: loop body
LE: loop exit
PB: predicated region body
PF: predicated region fallthrough
CT: control target
= control target key end

     0   :  { %8 = vsyncpa [#allocation3], 0  ;;  %s345_s0 = inlined_call_operand.hbm [shape: bf16[8,32], index: 0, kind: input, shape index: {}]   ;;  %s346_s1 = inlined_call_operand.hbm [shape: bf16[32,48], index: 1, kind: input, shape index: {}]   ;;  %s347_s2 = inlined_call_operand.hbm [shape: f32[8,8], index: 2, kind: input, shape index: {}]   ;;  %s348_s3 = inlined_call_operand.hbm [shape: f32[8,16], index: 3, kind: output, shape index: {}]  }
   0x1   :  { %9 = vsyncpa [#allocation6], 0  ;;  %s26_s14 = sshll.u32 %s346_s1, 4  ;;  %s27_s14 = int_to_ptr.hbm [resolvable:$true] %s26_s14 }
   0x2   :  { %10 = vsyncpa [#allocation4], 0  ;;  %s299_s15 = smov [#allocation5]   ;;  %s16_s19 = sshll.u32 %s345_s0, 4  ;;  %s17_s19 = int_to_ptr.hbm [resolvable:$true] %s16_s19 }
   0x3   :  { %s28_s16 = sshll.u32 %s299_s15, 4  ;;  %s300_s20 = smov 64   ;;  %s29_s16 = int_to_ptr.vmem [resolvable:$true] %s28_s16 }
   0x4   :  { %s301_s21 = smov 4   ;;  %s302_s22 = smov [#allocation2]  }
   0x5   :  { %34 = dma.hbm_to_vmem [thread:$0]  %s27_s14, 256, %s29_s16, [#allocation6], %s300_s20, %s300_s20, %s301_s21  }
   0x6   :  { %s18_s23 = sshll.u32 %s302_s22, 4  ;;  %s40_s26 = sshll.u32 %s347_s2, 4  ;;  %s19_s23 = int_to_ptr.vmem [resolvable:$true] %s18_s23  ;;  %s41_s26 = int_to_ptr.hbm [resolvable:$true] %s40_s26 }
   0x7   :  { %21 = dma.hbm_to_vmem [thread:$0]  %s17_s19, 64, %s19_s23, [#allocation3]  }
   0x8   :  { %s303_s1 = smov [#allocation7]  }
   0x9   :  { %s42_s27 = sshll.u32 %s303_s1, 4  ;;  %s43_s27 = int_to_ptr.vmem [resolvable:$true] %s42_s27 }
   0xa   :  { %45 = dma.hbm_to_vmem [thread:$0]  %s41_s26, 128, %s43_s27, [#allocation6]  }
   0xb   :  { %293 = dma.done.wait [#allocation3], 64  }
   0xc   :  { %294 = vsyncadd [#allocation3], 4294967232 }
   0xd   :  { %295 = dma.done.wait [#allocation6], 384  }
   0xe   :  { %296 = vsyncadd [#allocation6], 4294966912  ;;  %v184_v0 = vld [vmem:[#allocation5 + $0x8] sm:$0xff]  ;;  %v183_v1 = vld [vmem:[#allocation5] sm:$0xff]  ;;  %vm76_vm0 = vcmask 261120   ;;  %vm98_vm1 = vcmask 130048  }
   0xf   :  { %86 = vmatpush.bf16.msra.mxu0 %v184_v0  ;;  %v59_v2 = vld [vmem:[#allocation2] sm:$0xf]  ;;  %s304_s0 = smov 112   ;;  %v94_v8 = vld [vmem:[#allocation7] sm:$0xff]  ;;  %vm118_vm2 = vcmask 64512   ;;  %s305_s2 = smov 96  }
  0x10   :  { %vm136_vm3 = vcmask 1043456   ;;  %s306_s28 = smov [#allocation8]   ;;  %s161_s5 = sshll.u32 %s348_s3, 4  ;;  %s162_s5 = int_to_ptr.hbm [resolvable:$true] %s161_s5 }
  0x11   :  { %s159_s29 = sshll.u32 %s306_s28, 4  ;;  %s160_s29 = int_to_ptr.vmem [resolvable:$true] %s159_s29 }
  0x13   :  { %87 = vmatpush.bf16.msra.mxu0 %v183_v1 }
  0x16   :  { %180 = vmatmul.msk.bf16.vlgmr.msra.gmra.mxu0 %vm76_vm0, %v59_v2 }
  0x93   :  { %v89_v3 = vpop.f32.mrf.mxu0 }
  0x94   :  { %v93_v4 = vpack.c.bf16 %v89_v3, %v89_v3 }
  0x96   :  { %96 = vrot.lane.b32.xlu0 %v93_v4, %s304_s0  ;;  %v103_v5 = vsel %vm98_vm1, %v93_v4, 0 }
  0x97   :  { %112 = vmatpush.bf16.xpose.msra.mxu1 %v103_v5 }
  0x9b   :  { %v91_v6 = vpop.f32.mrf.mxu0 }
 0x108   :  { %v97_v7 = vpop.permute.xlu0 %96 }
 0x109   :  { %181 = vmatmul.msk.bf16.vlgmr.msra.gmra.mxu1 %vm98_vm1, %v97_v7 }
 0x186   :  { %v114_v9 = vpop.f32.mrf.mxu1 }
 0x187   :  { %v115_v10 = vadd.f32 %v114_v9, %v94_v8 }
 0x189   :  { %v119_v11 = vsel %vm118_vm2, %v115_v10, -inf }
 0x18a   :  { %120 = vmax.xlane.f32.xlu0 %v119_v11 }
 0x18e   :  { %v116_v12 = vpop.f32.mrf.mxu1 }
 0x1fd   :  { %v121_v13 = vpop.xlane.xlu0 %120 }
 0x1fe   :  { %v122_v14 = vsub.f32 %v115_v10, %v121_v13 }
 0x200   :  { %v123_v15 = vmul.f32 1.442695, %v122_v14 }
 0x202   :  { %193 = vpow2.f32 %v123_v15 }
 0x208   :  { %v194_v16 = vpop.eup %193 }
 0x209   :  { %v125_v17 = vsel %vm118_vm2, %v194_v16, 0.0 }
 0x20a   :  { %126 = vadd.xlane.f32.xlu1 %v125_v17 }
 0x223   :  { %131 = vrot.lane.b32.xlu1 %v93_v4, %s305_s2 }
 0x27d   :  { %v127_v18 = vpop.xlane.xlu1 %126 }
 0x27e   :  { %195 = vrcp.f32 %v127_v18 }
 0x284   :  { %v196_v19 = vpop.eup %195 }
 0x285   :  { %v129_v20 = vmul.f32 %v196_v19, %v194_v16 }
 0x287   :  { %v130_v23 = vpack.c.bf16 %v129_v20, %v129_v20 }
 0x295   :  { %v132_v21 = vpop.permute.xlu1 %131 }
 0x296   :  { %v138_v22 = vsel %vm136_vm3, %v132_v21, 0 }
 0x297   :  { %147 = vmatpush.bf16.msra.mxu2 %v138_v22 }
 0x29a   :  { %182 = vmatmul.msk.bf16.vlgmr.msra.gmra.mxu2 %vm118_vm2, %v130_v23 }
 0x31d   :  { %v149_v24 = vpop.f32.mrf.mxu2 }
 0x31e   :  { %153 = vst.msk [vmem:[#allocation8] sm:$0xff] %vm98_vm1, %v149_v24 }
 0x31f   :  { %164 = dma.vmem_to_hbm [thread:$0]  %s160_s29, 128, %s162_s5, [#allocation4]  }
 0x325   :  { %v151_v25 = vpop.f32.mrf.mxu2 }
 0x326   :  { %297 = dma.done.wait [#allocation4], 128  }
 0x327   :  { %298 = vsyncadd [#allocation4], 4294967168 }
 0x328   :  { %169 = vsyncpa [#allocation3], 1 }
 0x329   :  { %170 = vsyncpa [#allocation6], 1 }
 0x32a   :  { %171 = vsyncpa [#allocation4], 1 }

</bundles_post_ra>
